<compile_context>
chip_gen: v7x
topology: tpu7x:2x2x1
jax: 0.10.0
libtpu: 0.0.40
codegen_flags: <defaults>
</compile_context>

<pallas_src>
import functools

import jax
import jax.numpy as jnp
from jax import lax
from jax.experimental import pallas as pl
from jax.experimental.pallas import tpu as pltpu


def _phi(x, af):
    if af == "relu":
        return jnp.maximum(x, jnp.zeros((), x.dtype))
    if af == "tanh":
        return jnp.tanh(x)
    if af == "linear":
        return x
    raise ValueError("Error; No valid activation function.")


def _single_layer_kernel(x_ref, w_ref, b_ref, o_ref, r_ref, *, af, hoist_axis):
    """One (tb, V) batch tile x one (tn, V) weight panel -> (tb, tn) output."""

    def write_r():
        r_ref[...] = _phi(x_ref[...], af).astype(r_ref.dtype)

    if hoist_axis is None:
        # x tile changes every grid step -> recompute phi each step.
        write_r()
    else:
        # Same x tile revisited across weight panels -> compute phi once.
        @pl.when(pl.program_id(hoist_axis) == 0)
        def _():
            write_r()

    # u = r @ W^T : contract r's axis 1 with W's axis 1 (W is [out, in]).
    # NT-form matmul on the MXU with f32 accumulation; no operand upcast.
    u = lax.dot_general(
        r_ref[...],
        w_ref[...],
        dimension_numbers=(((1,), (1,)), ((), ())),
        preferred_element_type=jnp.float32,
    )
    u = u + b_ref[...].astype(jnp.float32)  # bias broadcast over rows
    o_ref[...] = u.astype(o_ref.dtype)


def _tpu_vmem_info():
    """Physical VMEM, a tiling budget (~3/4 of it), and a 2-TensorCore hint."""
    phys = 128 << 20
    try:
        info = pltpu.get_tpu_info()
        phys = int(getattr(info, "vmem_capacity_bytes", phys))
    except Exception:
        pass
    two_tc = phys <= (64 << 20)  # v7x: 64 MiB VMEM per TC, 2 TCs per chip
    budget = phys * 3 // 4       # ~48 MiB on v7x, ~96 MiB on v5e/v6e
    return phys, budget, two_tc


def _footprint(tb, tn, V, xis, wis, ois, bis, ris, w_bufs):
    """Whole per-kernel VMEM footprint (double-buffered pipeline buffers)."""
    return (2 * tb * V * xis          # x double-buffer
            + w_bufs * tn * V * wis   # W panel buffers
            + 2 * tb * tn * ois       # out double-buffer
            + 16 * tn * bis           # bias buffers (sublane-padded)
            + tb * V * ris)           # phi(x) scratch


def _choose_tiles(B, V, xis, wis, ois, bis, ris, budget, two_tc, tb_max=256):
    """Pick (tb, tn) so the full double-buffered footprint fits the budget."""
    tb = min(B, tb_max)

    def solve_tn(tb_, w_bufs=2):
        avail = budget - (2 * xis + ris) * tb_ * V
        denom = w_bufs * V * wis + 2 * tb_ * ois + 16 * bis
        if avail <= 0:
            return None
        tn_max = avail // denom
        if tn_max >= V:
            return V
        if tn_max >= 128:
            return int(min(V, (tn_max // 128) * 128))
        return None

    tn = solve_tn(tb)
    while tn is None and tb > 8:
        tb = max(8, (tb // 2) // 8 * 8)
        tn = solve_tn(tb)
    if tn is None:
        # TODO(synk): K-tiled (contraction-split) path for very large
        # visible_size; fall back to the narrowest lane-aligned panel.
        tn = min(V, 128)

    n_b = pl.cdiv(B, tb)
    n_n = pl.cdiv(V, tn)
    # v7x only: give the second TensorCore work when the grid would be 1 step.
    if two_tc and n_b == 1 and n_n == 1 and B >= 32 and (B // 2) % 8 == 0:
        tb = B // 2
    return tb, tn


def single_layer_forward(x, w, b=None, *, af="relu", low_precision=False,
                         tb=None, tn=None):
    """u = Linear(phi(x)); w has PyTorch layout (out_features, in_features)."""
    B, V = x.shape
    assert w.shape == (V, V), "square visible->visible weight expected"

    out_dtype = x.dtype
    if low_precision:
        # bf16-native MXU path: halves W HBM traffic; f32 accumulation kept.
        w = w.astype(jnp.bfloat16)
    r_dtype = jnp.bfloat16 if low_precision else x.dtype

    xis = jnp.dtype(x.dtype).itemsize
    wis = jnp.dtype(w.dtype).itemsize
    ois = jnp.dtype(out_dtype).itemsize
    ris = jnp.dtype(r_dtype).itemsize

    b2 = jnp.zeros((1, V), dtype=x.dtype) if b is None else b.reshape(1, V)
    bis = jnp.dtype(b2.dtype).itemsize

    phys, budget, two_tc = _tpu_vmem_info()

    if tb is None or tn is None:
        tb_c, tn_c = _choose_tiles(B, V, xis, wis, ois, bis, ris, budget, two_tc)
        tb = tb_c if tb is None else tb
        tn = tn_c if tn is None else tn

    n_b = pl.cdiv(B, tb)   # partial last batch block handled by masked writes
    n_n = pl.cdiv(V, tn)

    # Triple-buffer the weight panel when steps are short and budget allows.
    w_bufs = 2
    if (tb <= 64 and n_b * n_n >= 3
            and _footprint(tb, tn, V, xis, wis, ois, bis, ris, 3) <= budget):
        w_bufs = 3

    footprint = _footprint(tb, tn, V, xis, wis, ois, bis, ris, w_bufs)
    vmem_limit = int(min(phys * 7 // 8, max(footprint + (8 << 20), 32 << 20)))

    # Grid order by HBM traffic:
    #   panel-inner (default): x read once,      W read n_b times.
    #   batch-inner:           W read once,      x read n_n times.
    bytes_panel_inner = xis * B * V + wis * n_b * V * V
    bytes_batch_inner = xis * n_n * B * V + wis * V * V
    batch_inner = (n_b > 1 and n_n > 1 and bytes_batch_inner < bytes_panel_inner)

    if batch_inner:
        grid = (n_n, n_b)
        x_spec = pl.BlockSpec((tb, V), lambda j, i: (i, 0))
        w_shape, w_map = (tn, V), (lambda j, i: (j, 0))
        b_spec = pl.BlockSpec((1, tn), lambda j, i: (0, j))
        o_spec = pl.BlockSpec((tb, tn), lambda j, i: (i, j))
        hoist_axis = None                      # x tile changes every step
        dims = ("parallel", "parallel")
        hbm_bytes = bytes_batch_inner + ois * B * V + bis * V
    else:
        grid = (n_b, n_n)
        x_spec = pl.BlockSpec((tb, V), lambda i, j: (i, 0))
        w_shape, w_map = (tn, V), (lambda i, j: (j, 0))
        b_spec = pl.BlockSpec((1, tn), lambda i, j: (0, j))
        o_spec = pl.BlockSpec((tb, tn), lambda i, j: (i, j))
        if two_tc and n_b == 1 and n_n > 1:
            # Only the panel axis can feed both v7x cores: keep it parallel
            # (no hoist) instead of serializing it for the phi hoist.
            hoist_axis = None
            dims = ("parallel", "parallel")
        else:
            hoist_axis = 1
            dims = ("parallel", "arbitrary")
        hbm_bytes = bytes_panel_inner + ois * B * V + bis * V

    if w_bufs == 3:
        w_spec = pl.BlockSpec(w_shape, w_map, pipeline_mode=pl.Buffered(3))
    else:
        w_spec = pl.BlockSpec(w_shape, w_map)

    cost = pl.CostEstimate(
        flops=2 * B * V * V,
        transcendentals=B * V if af == "tanh" else 0,
        bytes_accessed=int(hbm_bytes),
    )

    kernel = functools.partial(_single_layer_kernel, af=af, hoist_axis=hoist_axis)

    return pl.pallas_call(
        kernel,
        out_shape=jax.ShapeDtypeStruct((B, V), out_dtype),
        grid_spec=pltpu.PrefetchScalarGridSpec(
            num_scalar_prefetch=0,
            grid=grid,
            in_specs=[x_spec, w_spec, b_spec],
            out_specs=o_spec,
            scratch_shapes=[pltpu.VMEM((tb, V), r_dtype)],  # phi(x) scratch
        ),
        compiler_params=pltpu.CompilerParams(
            dimension_semantics=dims,
            vmem_limit_bytes=vmem_limit,
        ),
        cost_estimate=cost,
    )(x, w, b2)


if __name__ == "__main__":
    # params = {'visible_size': 128, 'bias': True/False, 'af': ...}
    B, V = 8, 128

    key = jax.random.PRNGKey(0)
    kx, kw, kb = jax.random.split(key, 3)

    x = jax.random.normal(kx, (B, V), dtype=jnp.float32)
    bound = 1.0 / jnp.sqrt(jnp.float32(V))  # nn.Linear default init range
    w = jax.random.uniform(kw, (V, V), dtype=jnp.float32, minval=-bound, maxval=bound)
    b = jax.random.uniform(kb, (V,), dtype=jnp.float32, minval=-bound, maxval=bound)

    # Pure-JAX references for the exact forward semantics (all activations).
    refs = {
        "relu": jnp.maximum(x, 0.0) @ w.T + b,
        "tanh": jnp.tanh(x) @ w.T + b,
        "linear": x @ w.T + b,
    }
    for af, ref in refs.items():
        out = jax.block_until_ready(single_layer_forward(x, w, b, af=af))
        assert out.shape == (B, V)
        assert jnp.allclose(out, ref, atol=1e-5, rtol=1e-5), f"mismatch for af={af}"

    # bias=False path (params['bias'] = False).
    out_nb = jax.block_until_ready(single_layer_forward(x, w, None, af="relu"))
    assert jnp.allclose(out_nb, jnp.maximum(x, 0.0) @ w.T, atol=1e-5, rtol=1e-5)

    print("KERNEL_OK")
</pallas_src>

<mosaic_0001>
module attributes {stable_mosaic.version = 11 : i64} {
  func.func @_single_layer_kernel(%arg0: i32, %arg1: i32, %arg2: memref<8x128xf32, #tpu.memory_space<vmem>>, %arg3: memref<128x128xf32, #tpu.memory_space<vmem>>, %arg4: memref<1x128xf32, #tpu.memory_space<vmem>>, %arg5: memref<8x128xf32, #tpu.memory_space<vmem>>, %arg6: memref<8x128xf32, #tpu.memory_space<vmem>>) attributes {dimension_semantics = [#tpu.dimension_semantics<parallel>, #tpu.dimension_semantics<arbitrary>], iteration_bounds = array<i64: 1, 1>, scalar_prefetch = 0 : i64, scratch_operands = 1 : i64, tpu.core_type = #tpu.core_type<tc>, window_params = [{transform_indices = @transform_0, window_bounds = array<i64: 8, 128>}, {transform_indices = @transform_1, window_bounds = array<i64: 128, 128>}, {transform_indices = @transform_2, window_bounds = array<i64: 1, 128>}, {transform_indices = @transform_3, window_bounds = array<i64: 8, 128>}]} {
    %c0_i32 = arith.constant 0 : i32
    %0 = arith.cmpi eq, %arg1, %c0_i32 : i32
    %1 = arith.extui %0 : i1 to i32
    %c0_i32_0 = arith.constant 0 : i32
    %2 = arith.cmpi ne, %1, %c0_i32_0 : i32
    scf.if %2 {
      %c0_8 = arith.constant 0 : index
      %c0_9 = arith.constant 0 : index
      %10 = vector.load %arg2[%c0_8, %c0_9] : memref<8x128xf32, #tpu.memory_space<vmem>>, vector<8x128xf32>
      %cst_10 = arith.constant 0.000000e+00 : f32
      %11 = vector.broadcast %cst_10 : f32 to vector<8x128xf32>
      %12 = arith.maximumf %10, %11 : vector<8x128xf32>
      %c0_11 = arith.constant 0 : index
      %c0_12 = arith.constant 0 : index
      %13 = vector.load %arg6[%c0_11, %c0_12] : memref<8x128xf32, #tpu.memory_space<vmem>>, vector<8x128xf32>
      tpu.vector_store %arg6[%c0_11, %c0_12], %12 {strides = array<i32>} : memref<8x128xf32, #tpu.memory_space<vmem>>, vector<8x128xf32>,
    } else {
    }
    %c0 = arith.constant 0 : index
    %c0_1 = arith.constant 0 : index
    %3 = vector.load %arg6[%c0, %c0_1] : memref<8x128xf32, #tpu.memory_space<vmem>>, vector<8x128xf32>
    %c0_2 = arith.constant 0 : index
    %c0_3 = arith.constant 0 : index
    %4 = vector.load %arg3[%c0_2, %c0_3] : memref<128x128xf32, #tpu.memory_space<vmem>>, vector<128x128xf32>
    %cst = arith.constant dense<0.000000e+00> : vector<8x128xf32>
    %5 = tpu.matmul %3, %4, %cst {dimension_numbers = #tpu.dot_dimension_numbers<[1], [1], [0], [0], [0, 0, 1, 0], [], []>} : vector<8x128xf32>, vector<128x128xf32>, vector<8x128xf32> -> vector<8x128xf32>
    %c0_4 = arith.constant 0 : index
    %c0_5 = arith.constant 0 : index
    %6 = vector.load %arg4[%c0_4, %c0_5] : memref<1x128xf32, #tpu.memory_space<vmem>>, vector<1x128xf32>
    %7 = vector.broadcast %6 : vector<1x128xf32> to vector<8x128xf32>
    %8 = arith.addf %5, %7 : vector<8x128xf32>
    %c0_6 = arith.constant 0 : index
    %c0_7 = arith.constant 0 : index
    %9 = vector.load %arg5[%c0_6, %c0_7] : memref<8x128xf32, #tpu.memory_space<vmem>>, vector<8x128xf32>
    tpu.vector_store %arg5[%c0_6, %c0_7], %8 {strides = array<i32>} : memref<8x128xf32, #tpu.memory_space<vmem>>, vector<8x128xf32>,
    return
  }
  func.func @transform_0(%arg0: i32, %arg1: i32) -> (i32, i32) {
    %c0_i32 = arith.constant 0 : i32
    %c0_i32_0 = arith.constant 0 : i32
    return %arg0, %c0_i32 : i32, i32
  }
  func.func @transform_1(%arg0: i32, %arg1: i32) -> (i32, i32) {
    %c0_i32 = arith.constant 0 : i32
    %c0_i32_0 = arith.constant 0 : i32
    return %arg1, %c0_i32 : i32, i32
  }
  func.func @transform_2(%arg0: i32, %arg1: i32) -> (i32, i32) {
    %c0_i32 = arith.constant 0 : i32
    %c0_i32_0 = arith.constant 0 : i32
    return %c0_i32, %arg1 : i32, i32
  }
  func.func @transform_3(%arg0: i32, %arg1: i32) -> (i32, i32) {
    %c0_i32 = arith.constant 0 : i32
    return %arg0, %arg1 : i32, i32
  }
}

</mosaic_0001>

<bundles_post_ra>
// kernel: tpu_custom_call.1
= control target key start
LH: loop header
LB: loop body
LE: loop exit
PB: predicated region body
PF: predicated region fallthrough
CT: control target
= control target key end

     0   :  { %8 = vsyncpa [#allocation4], 0  ;;  %s390_s0 = inlined_call_operand.hbm [shape: f32[8,128], index: 0, kind: input, shape index: {}]   ;;  %s391_s1 = inlined_call_operand.hbm [shape: f32[128,128], index: 1, kind: input, shape index: {}]   ;;  %s392_s2 = inlined_call_operand.vmem [shape: f32[1,128], index: 2, kind: input, shape index: {}]   ;;  %s393_s3 = inlined_call_operand.hbm [shape: f32[8,128], index: 3, kind: output, shape index: {}]  }
   0x1   :  { %9 = vsyncpa [#allocation7], 0 }
   0x2   :  { %10 = vsyncpa [#allocation5], 0  ;;  %s316_s12 = smov [#allocation3]   ;;  %s317_s14 = smov [#allocation6]  }
   0x3   :  { %s17_s13 = sshll.u32 %s316_s12, 4  ;;  %s26_s15 = sshll.u32 %s317_s14, 4  ;;  %s18_s13 = int_to_ptr.vmem [resolvable:$true] %s17_s13  ;;  %s344_s15 = int_to_ptr.vmem [resolvable:$true] %s26_s15 }
   0x4   :  { %s244_s18 = scalar_lea.hbm %s390_s0, 128 }
   0x5   :  { %p245_p0 = scmp.ne.s32.totalorder %s390_s0, %s244_s18  ;;  %p248_p1 = scmp.lt.u32.totalorder %s244_s18, %s390_s0 }
   0x7   :  { %p250_p2 = pnand %p248_p1, %p245_p0 }
   0x9   :  { %253 = shalt.err (!%p250_p2)
}
   0xa   :  { %s254_s23 = scalar_lea.vmem %s18_s13, 128  ;;  %p259_p4 = scmp.lt.s32.totalorder %s18_s13, %s18_s13 }
   0xb   :  { %p255_p3 = scmp.ne.s32.totalorder %s18_s13, %s254_s23  ;;  %p260_p5 = scmp.lt.s32.totalorder %s254_s23, %s254_s23 }
   0xd   :  { %p261_p6 = por %p260_p5, %p259_p4 }
   0xf   :  { %p262_p7 = pnand %p261_p6, %p255_p3 }
  0x11   :  { %265 = shalt.err (!%p262_p7)
}
  0x12   :  { %20 = dma.hbm_to_vmem [thread:$0]  %s390_s0, 128, %s18_s13, [#allocation4]  }
  0x13   :  { %s266_s28 = scalar_lea.hbm %s391_s1, 2048 }
  0x14   :  { %p267_p8 = scmp.ne.s32.totalorder %s391_s1, %s266_s28  ;;  %p270_p9 = scmp.lt.u32.totalorder %s266_s28, %s391_s1 }
  0x16   :  { %p272_p10 = pnand %p270_p9, %p267_p8 }
  0x18   :  { %275 = shalt.err (!%p272_p10)
}
  0x19   :  { %s276_s6 = scalar_lea.vmem %s344_s15, 2048  ;;  %p281_p12 = scmp.lt.s32.totalorder %s344_s15, %s344_s15 }
  0x1a   :  { %p277_p11 = scmp.ne.s32.totalorder %s344_s15, %s276_s6  ;;  %p282_p13 = scmp.lt.s32.totalorder %s276_s6, %s276_s6 }
  0x1c   :  { %p283_p0 = por %p282_p13, %p281_p12 }
  0x1e   :  { %p284_p1 = pnand %p283_p0, %p277_p11 }
  0x20   :  { %287 = shalt.err (!%p284_p1)
}
  0x21   :  { %s318_s0 = smov 128   ;;  %s319_s7 = smov 8  }
  0x22   :  { %32 = dma.hbm_to_vmem [thread:$0]  %s391_s1, 2048, %s344_s15, [#allocation7], %s318_s0, %s318_s0, %s319_s7  }
  0x23   :  { %310 = dma.done.wait [#allocation4], 128  }
  0x24   :  { %311 = vsyncadd [#allocation4], 4294967168 }
  0x25   :  { %312 = dma.done.wait [#allocation7], 2048  }
  0x26   :  { %313 = vsyncadd [#allocation7], 4294965248  ;;  %v320_v0 = vmov 0.0|0.0   ;;  %vm321_vm0 = vmmov 0   ;;  %v322_v1 = vmov 0.0   ;;  %v49_v2 = vld [vmem:[#allocation6] sm:$0xff] }
  0x27   :  { %212 = vmatprep.subr.bf16.mxu0 %v320_v0  ;;  %209 = vmatprep.mubr.msk.f32.mxu0 %vm321_vm0, %v322_v1  ;;  %v50_v3 = vld [vmem:[#allocation6 + $0x8] sm:$0xff]  ;;  %v51_v5 = vld [vmem:[#allocation6 + $0x10] sm:$0xff]  ;;  %v52_v6 = vld [vmem:[#allocation6 + $0x18] sm:$0xff]  ;;  %s323_s11 = smov [#allocation8]  }
  0x28   :  { %v213_v4 = vpack.c.bf16 %v50_v3, %v49_v2  ;;  %v216_v7 = vpack.c.bf16 %v52_v6, %v51_v5  ;;  %v53_v8 = vld [vmem:[#allocation6 + $0x20] sm:$0xff]  ;;  %v54_v9 = vld [vmem:[#allocation6 + $0x28] sm:$0xff]  ;;  %v55_v11 = vld [vmem:[#allocation6 + $0x30] sm:$0xff]  ;;  %s149_s12 = sshll.u32 %s323_s11, 4  ;;  %s150_s12 = int_to_ptr.vmem [resolvable:$true] %s149_s12 }
  0x29   :  { %v219_v10 = vpack.c.bf16 %v54_v9, %v53_v8  ;;  %v56_v12 = vld [vmem:[#allocation6 + $0x38] sm:$0xff]  ;;  %v57_v14 = vld [vmem:[#allocation6 + $0x40] sm:$0xff]  ;;  %v58_v15 = vld [vmem:[#allocation6 + $0x48] sm:$0xff]  ;;  %s288_s13 = scalar_lea.vmem %s150_s12, 128  ;;  %p293_p3 = scmp.lt.s32.totalorder %s150_s12, %s150_s12 }
  0x2a   :  { %214 = vmatpush3.bf16.xpose.msra.mxu0 %v213_v4  ;;  %v222_v13 = vpack.c.bf16 %v56_v12, %v55_v11  ;;  %v225_v16 = vpack.c.bf16 %v58_v15, %v57_v14  ;;  %v59_v17 = vld [vmem:[#allocation6 + $0x50] sm:$0xff]  ;;  %v60_v18 = vld [vmem:[#allocation6 + $0x58] sm:$0xff]  ;;  %v61_v20 = vld [vmem:[#allocation6 + $0x60] sm:$0xff]  ;;  %p289_p2 = scmp.ne.s32.totalorder %s150_s12, %s288_s13  ;;  %p294_p4 = scmp.lt.s32.totalorder %s288_s13, %s288_s13 }
  0x2b   :  { %215 = vmatprep.subr.bf16.mxu0 %v320_v0  ;;  %v228_v19 = vpack.c.bf16 %v60_v18, %v59_v17  ;;  %v62_v21 = vld [vmem:[#allocation6 + $0x68] sm:$0xff]  ;;  %v63_v23 = vld [vmem:[#allocation6 + $0x70] sm:$0xff]  ;;  %v64_v24 = vld [vmem:[#allocation6 + $0x78] sm:$0xff] }
  0x2c   :  { %v231_v22 = vpack.c.bf16 %v62_v21, %v61_v20  ;;  %v234_v25 = vpack.c.bf16 %v64_v24, %v63_v23  ;;  %v45_v26 = vld [vmem:[#allocation3] sm:$0xff]  ;;  %p295_p5 = por %p294_p4, %p293_p3 }
  0x2d   :  { %v46_v27 = vmax.f32 %v45_v26, 0.0  ;;  %v159_v28 = vld [vmem:[%s392_s2] ss:$0 sm:$0xff] }
  0x2e   :  { %p296_p6 = pnand %p295_p5, %p289_p2 }
  0x32   :  { %217 = vmatpush3.bf16.xpose.msra.mxu0 %v216_v7 }
  0x33   :  { %218 = vmatprep.subr.bf16.mxu0 %v320_v0 }
  0x3a   :  { %220 = vmatpush3.bf16.xpose.msra.mxu0 %v219_v10 }
  0x3b   :  { %221 = vmatprep.subr.bf16.mxu0 %v320_v0 }
  0x42   :  { %223 = vmatpush3.bf16.xpose.msra.mxu0 %v222_v13 }
  0x43   :  { %224 = vmatprep.subr.bf16.mxu0 %v320_v0 }
  0x4a   :  { %226 = vmatpush3.bf16.xpose.msra.mxu0 %v225_v16 }
  0x4b   :  { %227 = vmatprep.subr.bf16.mxu0 %v320_v0 }
  0x52   :  { %229 = vmatpush3.bf16.xpose.msra.mxu0 %v228_v19 }
  0x53   :  { %230 = vmatprep.subr.bf16.mxu0 %v320_v0 }
  0x5a   :  { %232 = vmatpush3.bf16.xpose.msra.mxu0 %v231_v22 }
  0x5b   :  { %233 = vmatprep.subr.bf16.mxu0 %v320_v0 }
  0x62   :  { %235 = vmatpush3.bf16.xpose.msra.mxu0 %v234_v25 }
  0x69   :  { %210 = vmatmul.mubr.f32.vlgmr.msra.gmra.mrb[0].mxu0 %v46_v27 }
 0x13c   :  { %v138_v29 = vpop.f32.mrb[0].mxu0 }
 0x13d   :  { %v139_v30 = vadd.f32 %v159_v28, %v138_v29  ;;  %v211_v31 = vpop.f32.mrb[1].mxu0 }
 0x13f   :  { %142 = vst [vmem:[#allocation8] sm:$0xff] %v139_v30 }
 0x140   :  { %299 = shalt.err (!%p296_p6)
}
 0x141   :  { %s300_s16 = scalar_lea.hbm %s393_s3, 128 }
 0x142   :  { %p301_p7 = scmp.ne.s32.totalorder %s393_s3, %s300_s16  ;;  %p304_p8 = scmp.lt.u32.totalorder %s300_s16, %s393_s3 }
 0x144   :  { %p306_p9 = pnand %p304_p8, %p301_p7 }
 0x146   :  { %309 = shalt.err (!%p306_p9)
}
 0x147   :  { %152 = dma.vmem_to_hbm [thread:$0]  %s150_s12, 128, %s393_s3, [#allocation5]  }
 0x148   :  { %314 = dma.done.wait [#allocation5], 128  }
 0x149   :  { %315 = vsyncadd [#allocation5], 4294967168 }
 0x14a   :  { %156 = vsyncpa [#allocation4], 1 }
 0x14b   :  { %157 = vsyncpa [#allocation7], 1 }
 0x14c   :  { %158 = vsyncpa [#allocation5], 1 }

</bundles_post_ra>
